<compile_context>
chip_gen: v6e
topology: v6e:2x2x1
jax: 0.10.0
libtpu: 0.0.40
codegen_flags: <defaults>
</compile_context>

<pallas_src>
import functools

import jax
import jax.numpy as jnp
from jax import lax
from jax.experimental import pallas as pl
from jax.experimental.pallas import tpu as pltpu


def _round_up(x, m):
    return ((x + m - 1) // m) * m


def _round_down(x, m):
    return (x // m) * m


def _layer_norm(x, w, b, eps):
    # x: (rows, D) f32;  w, b: (1, D)
    mu = jnp.mean(x, axis=-1, keepdims=True)
    xc = x - mu
    var = jnp.mean(xc * xc, axis=-1, keepdims=True)
    return xc * lax.rsqrt(var + eps) * w + b


def _wordguided_layer_kernel(arc_ref, res_ref,
                             gln_w_ref, gln_b_ref,
                             w1_ref, b1_ref, w2_ref, b2_ref,
                             fln_w_ref, fln_b_ref,
                             out_ref, acc_ref,
                             *, normalize_before, n_arcs, arc_chunk, n_chunks,
                             ln_eps):
    """Grid = (row tiles [parallel], arc chunks [arbitrary, reduction]).

    arc_ref : (TR, TN, D) chunk of src_incoming_arc_x rows
    res_ref : (TR, D)     layer-input rows (residual), row-major over (B, T)
    acc_ref : (TR, D)     f32 scratch accumulator (unused when n_chunks == 1)
    out_ref : (TR, D)

    NOTE: when M % TR != 0 the last row tile contains garbage rows; every op
    here is row-local (LN, matmuls, elementwise) and the OOB writeback is
    masked, so results stay correct.  Do NOT add cross-row reductions here.
    """
    f32 = jnp.float32

    def arc_partial_sum():
        arc = arc_ref[...].astype(f32)
        if n_arcs % arc_chunk != 0:
            # Mask the (undefined) tail of the last, partial arc chunk.
            j = pl.program_id(1)
            idx = lax.broadcasted_iota(jnp.int32, (1, arc_chunk, 1), 1)
            arc = jnp.where(j * arc_chunk + idx < n_arcs, arc, 0.0)
        return jnp.sum(arc, axis=1)

    def finalize(arc_sum):
        # (U_in + U_out).sum(dim=2) == 2 * sum_n arc   (eval mode, 'dep' branch)
        h = 2.0 * arc_sum + res_ref[...].astype(f32)
        h = _layer_norm(h, gln_w_ref[...].astype(f32),
                        gln_b_ref[...].astype(f32), ln_eps)
        residual = h
        if normalize_before:
            h = _layer_norm(h, fln_w_ref[...].astype(f32),
                            fln_b_ref[...].astype(f32), ln_eps)
        # MXU matmuls: low-precision operands, f32 accumulation.
        h1 = jnp.dot(h.astype(w1_ref.dtype), w1_ref[...],
                     preferred_element_type=f32) + b1_ref[...].astype(f32)
        h1 = jnp.maximum(h1, 0.0)                      # relu activation_fn
        h2 = jnp.dot(h1.astype(w2_ref.dtype), w2_ref[...],
                     preferred_element_type=f32) + b2_ref[...].astype(f32)
        h = residual + h2
        if not normalize_before:
            h = _layer_norm(h, fln_w_ref[...].astype(f32),
                            fln_b_ref[...].astype(f32), ln_eps)
        out_ref[...] = h.astype(out_ref.dtype)

    if n_chunks == 1:
        # Single arc chunk: no accumulator / init / finalize branching.
        finalize(arc_partial_sum())
    else:
        j = pl.program_id(1)

        @pl.when(j == 0)
        def _init():
            acc_ref[...] = jnp.zeros_like(acc_ref)

        acc_ref[...] += arc_partial_sum()

        @pl.when(j == n_chunks - 1)
        def _fin():
            finalize(acc_ref[...])


def _vmem_budget_bytes():
    """Per-generation VMEM budget for all live kernel buffers (with headroom)."""
    cap = 64 * 1024 * 1024                 # conservative fallback (v7x per-TC)
    try:
        info = pltpu.get_tpu_info()
        cap = int(getattr(info, "vmem_capacity_bytes", cap))
    except Exception:
        pass
    if cap <= 64 * 1024 * 1024:            # v7x: 64 MiB per TensorCore
        return 44 * 1024 * 1024
    return 96 * 1024 * 1024                # v5e / v6e: 128 MiB physical VMEM


def _pick_tiles(M, N, D, F, arc_itemsize, res_itemsize, out_itemsize,
                weight_itemsize, budget, row_tile_cap, arc_tile_cap):
    """Solve for (row_tile, arc_tile, arc_pipeline_depth) under a VMEM budget."""
    # Row tile: multiple of 8 (or the full row count).  On dual-TC parts (v7x)
    # make sure the "parallel" row axis gets at least two tiles.
    tr = min(row_tile_cap, M)
    if tr < M:
        tr = max(8, _round_down(tr, 8))
    if M > 8 and pl.cdiv(M, tr) < 2:
        tr = min(tr, _round_up(pl.cdiv(M, 2), 8))

    # Grid-invariant operands; assume double-buffered (conservative — the
    # Buffered(1) specs below only free extra VMEM beyond this plan).
    fixed = 2 * (D * F + F * D) * weight_itemsize + 2 * (F + 5 * D) * 4
    arc_row_bytes = D * arc_itemsize
    depth = 3                              # arc pipeline depth (hides epilogue)

    while True:
        per_row = (2 * D * res_itemsize + 2 * D * out_itemsize  # res/out dbl-buf
                   + D * 4                                      # f32 accumulator
                   + F * 4 + 3 * D * 4)                         # f32 FFN/LN temps
        avail = budget - fixed - tr * per_row
        tn = avail // (depth * tr * arc_row_bytes) if avail > 0 else 0
        if tn >= min(N, 8):
            break
        if depth > 2:
            depth = 2
            continue
        if tr > 8:
            tr = max(8, _round_down(tr // 2, 8))
            continue
        tn = 8                             # smallest legal tile; give up shrinking
        break

    tn = min(int(tn), N, arc_tile_cap)
    if tn < N:                             # must be a multiple of 8 unless == N
        tn = max(8, _round_down(tn, 8))
    return int(tr), int(tn), int(depth)


def word_guided_transformer_encoder_layer(
        h, src_outcoming_arc_x=None, src_incoming_arc_x=None,
        encoder_padding_mask=None, attn_mask=None, src_probs_matrix=None,
        *, params, normalize_before=False, mxu_dtype=jnp.bfloat16,
        ln_eps=1e-5, row_tile_cap=256, arc_tile_cap=4096):
    """Forward of wordGuidedTransformerEncoderLayer (syntax_type='dep', eval).

    h:                  (T, B, D)    layer input (seq_len, batch, embed_dim)
    src_incoming_arc_x: (B, T, N, D) incoming-arc features (feed bf16 if possible
                        — the kernel is HBM-bound on this read)
    Returns (T, B, D).
    Set mxu_dtype=jnp.float32 for bit-closer parity checks vs the f32 reference.
    """
    if src_incoming_arc_x is None:
        raise ValueError("src_incoming_arc_x is required for syntax_type='dep'")
    T, B, D = h.shape
    Bn, Tn, N, Dn = src_incoming_arc_x.shape
    assert (Bn, Tn, Dn) == (B, T, D)

    # TODO(synk): attn_mask / encoder_padding_mask / src_outcoming_arc_x /
    # src_probs_matrix are accepted for API parity but are never read by the
    # reference 'dep' forward (the masked_fill result is discarded), so they
    # are not passed to the kernel.  For best layouts keep D a multiple of 128.

    out_dtype = h.dtype
    M = B * T
    # Row-major over (B, T): transpose the small (T,B,D) tensor instead of the
    # large arc tensor so both flatten with the same row ordering.
    res_rows = jnp.transpose(h, (1, 0, 2)).reshape(M, D)
    arc_rows = src_incoming_arc_x.reshape(M, N, D)       # no pad, no extra copy

    # Weights in (in, out) layout, cast once host-side for bf16 MXU operands.
    w1 = params['w1'].astype(mxu_dtype)                  # (D, F)
    w2 = params['w2'].astype(mxu_dtype)                  # (F, D)
    F = w1.shape[1]

    budget = _vmem_budget_bytes()
    arc_itemsize = arc_rows.dtype.itemsize
    tr, tn, depth = _pick_tiles(
        M, N, D, F, arc_itemsize, res_rows.dtype.itemsize,
        jnp.dtype(out_dtype).itemsize, jnp.dtype(mxu_dtype).itemsize,
        budget, row_tile_cap, arc_tile_cap)
    grid = (pl.cdiv(M, tr), pl.cdiv(N, tn))

    kernel = functools.partial(
        _wordguided_layer_kernel, normalize_before=normalize_before,
        n_arcs=N, arc_chunk=tn, n_chunks=grid[1], ln_eps=ln_eps)

    cost = pl.CostEstimate(
        flops=int(4 * M * D * F + 2 * M * N * D),
        transcendentals=int(2 * M),
        bytes_accessed=int(M * N * D * arc_itemsize
                           + M * D * (res_rows.dtype.itemsize
                                      + jnp.dtype(out_dtype).itemsize)
                           + 2 * D * F * jnp.dtype(mxu_dtype).itemsize))

    def build_and_run(use_pipeline_mode):
        def spec(shape, index_map, buffers=None):
            if use_pipeline_mode and buffers is not None:
                return pl.BlockSpec(shape, index_map,
                                    pipeline_mode=pl.Buffered(buffers))
            return pl.BlockSpec(shape, index_map)

        def invariant(shape):
            # Grid-invariant operands: single-buffer to free VMEM.
            return spec(shape, lambda i, j, _r=len(shape): (0,) * _r, buffers=1)

        row_spec = pl.BlockSpec((tr, D), lambda i, j: (i, 0))
        arc_spec = spec((tr, tn, D), lambda i, j: (i, j, 0), buffers=depth)

        return pl.pallas_call(
            kernel,
            out_shape=jax.ShapeDtypeStruct((M, D), out_dtype),
            grid=grid,
            in_specs=[
                arc_spec,                                   # src_incoming_arc_x
                row_spec,                                   # residual rows
                invariant(params['gln_w'].shape),           # gcn_layer_norm w
                invariant(params['gln_b'].shape),           # gcn_layer_norm b
                invariant(w1.shape),                        # fc1 weight (D, F)
                invariant(params['b1'].shape),              # fc1 bias   (1, F)
                invariant(w2.shape),                        # fc2 weight (F, D)
                invariant(params['b2'].shape),              # fc2 bias   (1, D)
                invariant(params['fln_w'].shape),           # final_layer_norm w
                invariant(params['fln_b'].shape),           # final_layer_norm b
            ],
            out_specs=row_spec,
            scratch_shapes=[pltpu.VMEM((tr, D), jnp.float32)],
            compiler_params=pltpu.CompilerParams(
                dimension_semantics=("parallel", "arbitrary"),
                vmem_limit_bytes=int(budget)),
            cost_estimate=cost,
        )(arc_rows, res_rows,
          params['gln_w'], params['gln_b'],
          w1, params['b1'], w2, params['b2'],
          params['fln_w'], params['fln_b'])

    use_pm = hasattr(pl, "Buffered")
    try:
        out_rows = build_and_run(use_pm)
    except Exception:
        if not use_pm:
            raise
        # Graceful fallback if pipeline_mode / Buffered is unsupported here.
        out_rows = build_and_run(False)

    # TODO(synk): if the consumer can take (B, T, D), skip this transpose.
    return jnp.transpose(out_rows.reshape(B, T, D), (1, 0, 2))   # (T, B, D)


def make_params(key, embed_dim, ffn_dim):
    ks = jax.random.split(key, 4)
    n = lambda k, s: (0.02 * jax.random.normal(k, s)).astype(jnp.float32)
    D, F = embed_dim, ffn_dim
    return {
        # fc1 / fc2 stored in (in, out) layout so the kernel does plain
        # [rows, D] @ [D, F] / [rows, F] @ [F, D] with no in-kernel transpose.
        # (Transpose PyTorch nn.Linear (out,in) weights when importing.)
        'w1': n(ks[0], (D, F)), 'b1': n(ks[1], (1, F)),
        'w2': n(ks[2], (F, D)), 'b2': n(ks[3], (1, D)),
        'gln_w': jnp.ones((1, D), jnp.float32),
        'gln_b': jnp.zeros((1, D), jnp.float32),
        'fln_w': jnp.ones((1, D), jnp.float32),
        'fln_b': jnp.zeros((1, D), jnp.float32),
    }


def _reference(h, arc, params, normalize_before, ln_eps=1e-5):
    """Pure-JAX f32 reference of the 'dep' eval-mode forward."""
    f32 = jnp.float32

    def ln(x, w, b):
        mu = x.mean(-1, keepdims=True)
        xc = x - mu
        return xc * lax.rsqrt((xc * xc).mean(-1, keepdims=True) + ln_eps) * w[0] + b[0]

    s = 2.0 * jnp.sum(arc.astype(f32), axis=2)            # (B, T, D)
    x = jnp.transpose(s, (1, 0, 2)) + h.astype(f32)       # (T, B, D)
    x = ln(x, params['gln_w'], params['gln_b'])
    r = x
    if normalize_before:
        x = ln(x, params['fln_w'], params['fln_b'])
    x1 = jnp.maximum(x @ params['w1'] + params['b1'][0], 0.0)
    x2 = x1 @ params['w2'] + params['b2'][0]
    x = r + x2
    if not normalize_before:
        x = ln(x, params['fln_w'], params['fln_b'])
    return x


if __name__ == "__main__":
    # Small deterministic example: seq=8, batch=2, embed=32, arcs=12, ffn=64.
    T, B, D, N, F = 8, 2, 32, 12, 64

    root = jax.random.PRNGKey(0)
    kh, ka, kp = jax.random.split(root, 3)

    params = make_params(kp, D, F)
    h = jax.random.normal(kh, (T, B, D), jnp.float32)               # (seq, batch, embed)
    # Producer-side bf16 arcs: the kernel is HBM-bound on this read, so bf16
    # roughly halves its wall-clock on v5e/v6e (f32 also works).
    src_incoming_arc_x = (0.1 * jax.random.normal(ka, (B, T, N, D), jnp.float32)
                          ).astype(jnp.bfloat16)

    # Unused-by-the-reference inputs, passed for API parity.
    pad_mask = jnp.zeros((B, T), jnp.float32).at[1, T - 2:].set(1.0)
    attn_mask = (jnp.arange(T)[:, None] - jnp.arange(T)[None, :] > 4).astype(jnp.float32)

    ref = _reference(h, src_incoming_arc_x, params, normalize_before=False)

    # Run 1: forced small tiles -> exercises both grid axes, the accumulator
    # init/finalize path and the partial-tail arc masking (N % tn != 0).
    out_small = word_guided_transformer_encoder_layer(
        h, src_outcoming_arc_x=None, src_incoming_arc_x=src_incoming_arc_x,
        encoder_padding_mask=pad_mask, attn_mask=attn_mask,
        params=params, normalize_before=False,
        row_tile_cap=8, arc_tile_cap=8)
    out_small = jax.block_until_ready(out_small)

    # Run 2: auto (VMEM-budget-derived) tiles -> single arc chunk fast path.
    out_auto = word_guided_transformer_encoder_layer(
        h, src_outcoming_arc_x=None, src_incoming_arc_x=src_incoming_arc_x,
        encoder_padding_mask=pad_mask, attn_mask=attn_mask,
        params=params, normalize_before=False)
    out_auto = jax.block_until_ready(out_auto)

    assert out_small.shape == (T, B, D) and out_auto.shape == (T, B, D)
    assert bool(jnp.all(jnp.isfinite(out_small)))
    assert bool(jnp.all(jnp.isfinite(out_auto)))
    # bf16 MXU operands vs f32 reference -> small relative deviation expected.
    assert bool(jnp.allclose(out_small, ref, atol=3e-2, rtol=3e-2))
    assert bool(jnp.allclose(out_auto, ref, atol=3e-2, rtol=3e-2))
    assert bool(jnp.allclose(out_small, out_auto, atol=1e-3, rtol=1e-3))
    print("KERNEL_OK")
</pallas_src>

<mosaic_0001>
module attributes {stable_mosaic.version = 11 : i64} {
  func.func @_wordguided_layer_kernel(%arg0: i32, %arg1: i32, %arg2: memref<8x8x32xbf16, #tpu.memory_space<vmem>>, %arg3: memref<8x32xf32, #tpu.memory_space<vmem>>, %arg4: memref<1x32xf32, #tpu.memory_space<vmem>>, %arg5: memref<1x32xf32, #tpu.memory_space<vmem>>, %arg6: memref<32x64xbf16, #tpu.memory_space<vmem>>, %arg7: memref<1x64xf32, #tpu.memory_space<vmem>>, %arg8: memref<64x32xbf16, #tpu.memory_space<vmem>>, %arg9: memref<1x32xf32, #tpu.memory_space<vmem>>, %arg10: memref<1x32xf32, #tpu.memory_space<vmem>>, %arg11: memref<1x32xf32, #tpu.memory_space<vmem>>, %arg12: memref<8x32xf32, #tpu.memory_space<vmem>>, %arg13: memref<8x32xf32, #tpu.memory_space<vmem>>) attributes {dimension_semantics = [#tpu.dimension_semantics<parallel>, #tpu.dimension_semantics<arbitrary>], iteration_bounds = array<i64: 2, 2>, scalar_prefetch = 0 : i64, scratch_operands = 1 : i64, tpu.core_type = #tpu.core_type<tc>, window_params = [{transform_indices = @transform_0, window_bounds = array<i64: 8, 8, 32>}, {transform_indices = @transform_1, window_bounds = array<i64: 8, 32>}, {pipeline_mode = #tpu.pipeline_mode<synchronous>, transform_indices = @transform_2, window_bounds = array<i64: 1, 32>}, {pipeline_mode = #tpu.pipeline_mode<synchronous>, transform_indices = @transform_3, window_bounds = array<i64: 1, 32>}, {pipeline_mode = #tpu.pipeline_mode<synchronous>, transform_indices = @transform_4, window_bounds = array<i64: 32, 64>}, {pipeline_mode = #tpu.pipeline_mode<synchronous>, transform_indices = @transform_5, window_bounds = array<i64: 1, 64>}, {pipeline_mode = #tpu.pipeline_mode<synchronous>, transform_indices = @transform_6, window_bounds = array<i64: 64, 32>}, {pipeline_mode = #tpu.pipeline_mode<synchronous>, transform_indices = @transform_7, window_bounds = array<i64: 1, 32>}, {pipeline_mode = #tpu.pipeline_mode<synchronous>, transform_indices = @transform_8, window_bounds = array<i64: 1, 32>}, {pipeline_mode = #tpu.pipeline_mode<synchronous>, transform_indices = @transform_9, window_bounds = array<i64: 1, 32>}, {transform_indices = @transform_10, window_bounds = array<i64: 8, 32>}]} {
    %c0_i32 = arith.constant 0 : i32
    %0 = arith.cmpi eq, %arg1, %c0_i32 : i32
    %1 = arith.extui %0 : i1 to i32
    %c0_i32_0 = arith.constant 0 : i32
    %2 = arith.cmpi ne, %1, %c0_i32_0 : i32
    scf.if %2 {
      %cst_9 = arith.constant 0.000000e+00 : f32
      %22 = vector.broadcast %cst_9 : f32 to vector<8x32xf32>
      %c0_10 = arith.constant 0 : index
      %c0_11 = arith.constant 0 : index
      %23 = vector.load %arg13[%c0_10, %c0_11] : memref<8x32xf32, #tpu.memory_space<vmem>>, vector<8x32xf32>
      tpu.vector_store %arg13[%c0_10, %c0_11], %22 {strides = array<i32>} : memref<8x32xf32, #tpu.memory_space<vmem>>, vector<8x32xf32>,
    } else {
    }
    %c0 = arith.constant 0 : index
    %c0_1 = arith.constant 0 : index
    %3 = vector.load %arg13[%c0, %c0_1] : memref<8x32xf32, #tpu.memory_space<vmem>>, vector<8x32xf32>
    %c0_2 = arith.constant 0 : index
    %c0_3 = arith.constant 0 : index
    %c0_4 = arith.constant 0 : index
    %4 = vector.load %arg2[%c0_2, %c0_3, %c0_4] : memref<8x8x32xbf16, #tpu.memory_space<vmem>>, vector<8x8x32xbf16>
    %5 = arith.extf %4 : vector<8x8x32xbf16> to vector<8x8x32xf32>
    %6 = tpu.iota {dimensions = array<i32: 1>} : vector<1x8x1xi32>
    %c8_i32 = arith.constant 8 : i32
    %7 = arith.muli %arg1, %c8_i32 : i32
    %8 = vector.broadcast %7 : i32 to vector<1x8x1xi32>
    %9 = arith.addi %8, %6 : vector<1x8x1xi32>
    %c12_i32 = arith.constant 12 : i32
    %10 = vector.broadcast %c12_i32 : i32 to vector<1x8x1xi32>
    %11 = arith.cmpi slt, %9, %10 : vector<1x8x1xi32>
    %cst = arith.constant 0.000000e+00 : f32
    %12 = vector.shape_cast %11 : vector<1x8x1xi1> to vector<1x8x1xi1>
    %13 = vector.broadcast %12 : vector<1x8x1xi1> to vector<8x8x32xi1>
    %14 = vector.broadcast %cst : f32 to vector<8x8x32xf32>
    %15 = arith.select %13, %5, %14 : vector<8x8x32xi1>, vector<8x8x32xf32>
    %cst_5 = arith.constant dense<0.000000e+00> : vector<8x32xf32>
    %16 = vector.multi_reduction <add>, %15, %cst_5 [1] : vector<8x8x32xf32> to vector<8x32xf32>
    %17 = arith.addf %3, %16 : vector<8x32xf32>
    %c0_6 = arith.constant 0 : index
    %c0_7 = arith.constant 0 : index
    %18 = vector.load %arg13[%c0_6, %c0_7] : memref<8x32xf32, #tpu.memory_space<vmem>>, vector<8x32xf32>
    tpu.vector_store %arg13[%c0_6, %c0_7], %17 {strides = array<i32>} : memref<8x32xf32, #tpu.memory_space<vmem>>, vector<8x32xf32>,
    %c1_i32 = arith.constant 1 : i32
    %19 = arith.cmpi eq, %arg1, %c1_i32 : i32
    %20 = arith.extui %19 : i1 to i32
    %c0_i32_8 = arith.constant 0 : i32
    %21 = arith.cmpi ne, %20, %c0_i32_8 : i32
    scf.if %21 {
      %c0_9 = arith.constant 0 : index
      %c0_10 = arith.constant 0 : index
      %22 = vector.load %arg13[%c0_9, %c0_10] : memref<8x32xf32, #tpu.memory_space<vmem>>, vector<8x32xf32>
      %cst_11 = arith.constant 2.000000e+00 : f32
      %23 = vector.broadcast %cst_11 : f32 to vector<8x32xf32>
      %24 = arith.mulf %23, %22 : vector<8x32xf32>
      %c0_12 = arith.constant 0 : index
      %c0_13 = arith.constant 0 : index
      %25 = vector.load %arg3[%c0_12, %c0_13] : memref<8x32xf32, #tpu.memory_space<vmem>>, vector<8x32xf32>
      %26 = arith.addf %24, %25 : vector<8x32xf32>
      %c0_14 = arith.constant 0 : index
      %c0_15 = arith.constant 0 : index
      %27 = vector.load %arg4[%c0_14, %c0_15] : memref<1x32xf32, #tpu.memory_space<vmem>>, vector<1x32xf32>
      %c0_16 = arith.constant 0 : index
      %c0_17 = arith.constant 0 : index
      %28 = vector.load %arg5[%c0_16, %c0_17] : memref<1x32xf32, #tpu.memory_space<vmem>>, vector<1x32xf32>
      %cst_18 = arith.constant dense<0.000000e+00> : vector<8xf32>
      %29 = vector.multi_reduction <add>, %26, %cst_18 [1] : vector<8x32xf32> to vector<8xf32>
      %30 = vector.shape_cast %29 : vector<8xf32> to vector<8x1xf32>
      %cst_19 = arith.constant 3.200000e+01 : f32
      %31 = vector.broadcast %cst_19 : f32 to vector<8x1xf32>
      %32 = arith.divf %30, %31 : vector<8x1xf32>
      %33 = vector.broadcast %32 : vector<8x1xf32> to vector<8x32xf32>
      %34 = arith.subf %26, %33 : vector<8x32xf32>
      %35 = arith.mulf %34, %34 : vector<8x32xf32>
      %cst_20 = arith.constant dense<0.000000e+00> : vector<8xf32>
      %36 = vector.multi_reduction <add>, %35, %cst_20 [1] : vector<8x32xf32> to vector<8xf32>
      %37 = vector.shape_cast %36 : vector<8xf32> to vector<8x1xf32>
      %cst_21 = arith.constant 3.200000e+01 : f32
      %38 = vector.broadcast %cst_21 : f32 to vector<8x1xf32>
      %39 = arith.divf %37, %38 : vector<8x1xf32>
      %cst_22 = arith.constant 9.99999974E-6 : f32
      %40 = vector.broadcast %cst_22 : f32 to vector<8x1xf32>
      %41 = arith.addf %39, %40 : vector<8x1xf32>
      %42 = math.rsqrt %41 : vector<8x1xf32>
      %43 = vector.broadcast %42 : vector<8x1xf32> to vector<8x32xf32>
      %44 = arith.mulf %34, %43 : vector<8x32xf32>
      %45 = vector.broadcast %27 : vector<1x32xf32> to vector<8x32xf32>
      %46 = arith.mulf %44, %45 : vector<8x32xf32>
      %47 = vector.broadcast %28 : vector<1x32xf32> to vector<8x32xf32>
      %48 = arith.addf %46, %47 : vector<8x32xf32>
      %49 = arith.truncf %48 : vector<8x32xf32> to vector<8x32xbf16>
      %c0_23 = arith.constant 0 : index
      %c0_24 = arith.constant 0 : index
      %50 = vector.load %arg6[%c0_23, %c0_24] : memref<32x64xbf16, #tpu.memory_space<vmem>>, vector<32x64xbf16>
      %cst_25 = arith.constant dense<0.000000e+00> : vector<8x64xf32>
      %51 = tpu.matmul %49, %50, %cst_25 {dimension_numbers = #tpu.dot_dimension_numbers<[1], [0], [0], [1], [0, 0, 1, 1], [], []>} : vector<8x32xbf16>, vector<32x64xbf16>, vector<8x64xf32> -> vector<8x64xf32>
      %c0_26 = arith.constant 0 : index
      %c0_27 = arith.constant 0 : index
      %52 = vector.load %arg7[%c0_26, %c0_27] : memref<1x64xf32, #tpu.memory_space<vmem>>, vector<1x64xf32>
      %53 = vector.broadcast %52 : vector<1x64xf32> to vector<8x64xf32>
      %54 = arith.addf %51, %53 : vector<8x64xf32>
      %cst_28 = arith.constant 0.000000e+00 : f32
      %55 = vector.broadcast %cst_28 : f32 to vector<8x64xf32>
      %56 = arith.maximumf %54, %55 : vector<8x64xf32>
      %57 = arith.truncf %56 : vector<8x64xf32> to vector<8x64xbf16>
      %c0_29 = arith.constant 0 : index
      %c0_30 = arith.constant 0 : index
      %58 = vector.load %arg8[%c0_29, %c0_30] : memref<64x32xbf16, #tpu.memory_space<vmem>>, vector<64x32xbf16>
      %cst_31 = arith.constant dense<0.000000e+00> : vector<8x32xf32>
      %59 = tpu.matmul %57, %58, %cst_31 {dimension_numbers = #tpu.dot_dimension_numbers<[1], [0], [0], [1], [0, 0, 1, 1], [], []>} : vector<8x64xbf16>, vector<64x32xbf16>, vector<8x32xf32> -> vector<8x32xf32>
      %c0_32 = arith.constant 0 : index
      %c0_33 = arith.constant 0 : index
      %60 = vector.load %arg9[%c0_32, %c0_33] : memref<1x32xf32, #tpu.memory_space<vmem>>, vector<1x32xf32>
      %61 = vector.broadcast %60 : vector<1x32xf32> to vector<8x32xf32>
      %62 = arith.addf %59, %61 : vector<8x32xf32>
      %63 = arith.addf %48, %62 : vector<8x32xf32>
      %c0_34 = arith.constant 0 : index
      %c0_35 = arith.constant 0 : index
      %64 = vector.load %arg10[%c0_34, %c0_35] : memref<1x32xf32, #tpu.memory_space<vmem>>, vector<1x32xf32>
      %c0_36 = arith.constant 0 : index
      %c0_37 = arith.constant 0 : index
      %65 = vector.load %arg11[%c0_36, %c0_37] : memref<1x32xf32, #tpu.memory_space<vmem>>, vector<1x32xf32>
      %cst_38 = arith.constant dense<0.000000e+00> : vector<8xf32>
      %66 = vector.multi_reduction <add>, %63, %cst_38 [1] : vector<8x32xf32> to vector<8xf32>
      %67 = vector.shape_cast %66 : vector<8xf32> to vector<8x1xf32>
      %cst_39 = arith.constant 3.200000e+01 : f32
      %68 = vector.broadcast %cst_39 : f32 to vector<8x1xf32>
      %69 = arith.divf %67, %68 : vector<8x1xf32>
      %70 = vector.broadcast %69 : vector<8x1xf32> to vector<8x32xf32>
      %71 = arith.subf %63, %70 : vector<8x32xf32>
      %72 = arith.mulf %71, %71 : vector<8x32xf32>
      %cst_40 = arith.constant dense<0.000000e+00> : vector<8xf32>
      %73 = vector.multi_reduction <add>, %72, %cst_40 [1] : vector<8x32xf32> to vector<8xf32>
      %74 = vector.shape_cast %73 : vector<8xf32> to vector<8x1xf32>
      %cst_41 = arith.constant 3.200000e+01 : f32
      %75 = vector.broadcast %cst_41 : f32 to vector<8x1xf32>
      %76 = arith.divf %74, %75 : vector<8x1xf32>
      %cst_42 = arith.constant 9.99999974E-6 : f32
      %77 = vector.broadcast %cst_42 : f32 to vector<8x1xf32>
      %78 = arith.addf %76, %77 : vector<8x1xf32>
      %79 = math.rsqrt %78 : vector<8x1xf32>
      %80 = vector.broadcast %79 : vector<8x1xf32> to vector<8x32xf32>
      %81 = arith.mulf %71, %80 : vector<8x32xf32>
      %82 = vector.broadcast %64 : vector<1x32xf32> to vector<8x32xf32>
      %83 = arith.mulf %81, %82 : vector<8x32xf32>
      %84 = vector.broadcast %65 : vector<1x32xf32> to vector<8x32xf32>
      %85 = arith.addf %83, %84 : vector<8x32xf32>
      %c0_43 = arith.constant 0 : index
      %c0_44 = arith.constant 0 : index
      %86 = vector.load %arg12[%c0_43, %c0_44] : memref<8x32xf32, #tpu.memory_space<vmem>>, vector<8x32xf32>
      tpu.vector_store %arg12[%c0_43, %c0_44], %85 {strides = array<i32>} : memref<8x32xf32, #tpu.memory_space<vmem>>, vector<8x32xf32>,
    } else {
    }
    return
  }
  func.func @transform_0(%arg0: i32, %arg1: i32) -> (i32, i32, i32) {
    %c0_i32 = arith.constant 0 : i32
    %c0_i32_0 = arith.constant 0 : i32
    return %arg0, %arg1, %c0_i32 : i32, i32, i32
  }
  func.func @transform_1(%arg0: i32, %arg1: i32) -> (i32, i32) {
    %c0_i32 = arith.constant 0 : i32
    %c0_i32_0 = arith.constant 0 : i32
    return %arg0, %c0_i32 : i32, i32
  }
  func.func @transform_2(%arg0: i32, %arg1: i32) -> (i32, i32) {
    %c0_i32 = arith.constant 0 : i32
    %c0_i32_0 = arith.constant 0 : i32
    %c0_i32_1 = arith.constant 0 : i32
    return %c0_i32, %c0_i32_0 : i32, i32
  }
  func.func @transform_3(%arg0: i32, %arg1: i32) -> (i32, i32) {
    %c0_i32 = arith.constant 0 : i32
    %c0_i32_0 = arith.constant 0 : i32
    %c0_i32_1 = arith.constant 0 : i32
    return %c0_i32, %c0_i32_0 : i32, i32
  }
  func.func @transform_4(%arg0: i32, %arg1: i32) -> (i32, i32) {
    %c0_i32 = arith.constant 0 : i32
    %c0_i32_0 = arith.constant 0 : i32
    %c0_i32_1 = arith.constant 0 : i32
    return %c0_i32, %c0_i32_0 : i32, i32
  }
  func.func @transform_5(%arg0: i32, %arg1: i32) -> (i32, i32) {
    %c0_i32 = arith.constant 0 : i32
    %c0_i32_0 = arith.constant 0 : i32
    %c0_i32_1 = arith.constant 0 : i32
    return %c0_i32, %c0_i32_0 : i32, i32
  }
  func.func @transform_6(%arg0: i32, %arg1: i32) -> (i32, i32) {
    %c0_i32 = arith.constant 0 : i32
    %c0_i32_0 = arith.constant 0 : i32
    %c0_i32_1 = arith.constant 0 : i32
    return %c0_i32, %c0_i32_0 : i32, i32
  }
  func.func @transform_7(%arg0: i32, %arg1: i32) -> (i32, i32) {
    %c0_i32 = arith.constant 0 : i32
    %c0_i32_0 = arith.constant 0 : i32
    %c0_i32_1 = arith.constant 0 : i32
    return %c0_i32, %c0_i32_0 : i32, i32
  }
  func.func @transform_8(%arg0: i32, %arg1: i32) -> (i32, i32) {
    %c0_i32 = arith.constant 0 : i32
    %c0_i32_0 = arith.constant 0 : i32
    %c0_i32_1 = arith.constant 0 : i32
    return %c0_i32, %c0_i32_0 : i32, i32
  }
  func.func @transform_9(%arg0: i32, %arg1: i32) -> (i32, i32) {
    %c0_i32 = arith.constant 0 : i32
    %c0_i32_0 = arith.constant 0 : i32
    %c0_i32_1 = arith.constant 0 : i32
    return %c0_i32, %c0_i32_0 : i32, i32
  }
  func.func @transform_10(%arg0: i32, %arg1: i32) -> (i32, i32) {
    %c0_i32 = arith.constant 0 : i32
    %c0_i32_0 = arith.constant 0 : i32
    return %arg0, %c0_i32 : i32, i32
  }
}

</mosaic_0001>

<bundles_post_ra>
// kernel: tpu_custom_call.1
= control target key start
LH: loop header
LB: loop body
LE: loop exit
PB: predicated region body
PF: predicated region fallthrough
CT: control target
= control target key end

     0   :  { %s1489_s0 = inlined_call_operand.vmem [shape: bf16[16,12,32], index: 0, kind: input, shape index: {}]   ;;  %s1490_s1 = inlined_call_operand.vmem [shape: f32[16,32], index: 1, kind: input, shape index: {}]   ;;  %s1491_s2 = inlined_call_operand.vmem [shape: f32[1,32], index: 2, kind: input, shape index: {}]   ;;  %s1492_s3 = inlined_call_operand.vmem [shape: f32[1,32], index: 3, kind: input, shape index: {}]   ;;  %s1493_s4 = inlined_call_operand.vmem [shape: bf16[32,64], index: 4, kind: input, shape index: {}]   ;;  %s1494_s5 = inlined_call_operand.vmem [shape: f32[1,64], index: 5, kind: input, shape index: {}]   ;;  %s1495_s6 = inlined_call_operand.vmem [shape: bf16[64,32], index: 6, kind: input, shape index: {}]   ;;  %s1496_s7 = inlined_call_operand.vmem [shape: f32[1,32], index: 7, kind: input, shape index: {}]   ;;  %s1497_s8 = inlined_call_operand.vmem [shape: f32[1,32], index: 8, kind: input, shape index: {}]   ;;  %s1498_s9 = inlined_call_operand.vmem [shape: f32[1,32], index: 9, kind: input, shape index: {}]   ;;  %s1499_s10 = inlined_call_operand.hbm [shape: f32[16,32], index: 10, kind: output, shape index: {}]  }
   0x1   :  { %1505 = sst [smem:[#allocation11_spill]] %s1489_s0 }
   0x2   :  { %1506 = sst [smem:[#allocation12_spill]] %s1490_s1 }
   0x3   :  { %1507 = sst [smem:[#allocation13_spill]] %s1498_s9 }
   0x4   :  { %1508 = sst [smem:[#allocation14_spill]] %s1499_s10 }
   0x5   :  { %15 = vsyncpa [#allocation5], 0 }
   0x6   :  { %17 = vsyncpa [#allocation5 + $0x1], 0  ;;  %s1261_s13 = smov 0   ;;  %s1263_s14 = smov 0  }
   0x7   :  { %s1265_s15 = smov 0   ;;  %s1267_s16 = smov 0  }
   0x8   :  { %s1269_s17 = smov 0   ;;  %s1271_s18 = smov 0  }
   0x9   :  { %s1273_s19 = smov 0   ;;  %s1275_s20 = smov 0  }
   0xa   :  { %s1277_s21 = smov 0   ;;  %s1279_s22 = smov 0  }
   0xb LB: > { %1509 = sst [smem:[#allocation7_spill]] %s1164_s13  ;;  %s911_s23 = sadd.s32 4294967295, %s1200_s22   ;;  %s1200_s22 = sphi %s1279_s22, %s23_s22   ;;  %s1196_s21 = sphi %s1277_s21, %s1532_s21   ;;  %s1192_s20 = sphi %s1275_s20, %s1531_s20   ;;  %s1188_s19 = sphi %s1273_s19, %s1530_s19   ;;  %s1184_s18 = sphi %s1271_s18, %s1529_s18   ;;  %s1180_s17 = sphi %s1269_s17, %s1528_s17   ;;  %s1176_s16 = sphi %s1267_s16, %s1527_s16   ;;  %s1172_s15 = sphi %s1265_s15, %s1526_s15   ;;  %s1168_s14 = sphi %s1263_s14, %s1525_s14   ;;  %s1164_s13 = sphi %s1261_s13, %s1524_s13  }
   0xc   : > { %s912_s24 = sadd.s32 4294967294, %s1200_s22   ;;  %s32_s25 = sadd.s32 1, %s1192_s20 }
   0xd   : > { %s35_s26 = sadd.s32 1, %s1196_s21  ;;  %p33_p0 = scmp.ge.s32.totalorder %s32_s25, 2 }
   0xe   : > { %s44_s27 = sadd.s32 1, %s1180_s17  ;;  %p51_p1 = scmp.ne.s32.totalorder %s1180_s17, %s1176_s16 }
   0xf   : > { %p52_p2 = scmp.eq.s32.totalorder %s1200_s22, 0  ;;  %s1534_s25 = smov (%p33_p0, %s32_s25), 0 }
  0x10   : > { %1510 = sst [smem:[#allocation8_spill]] %s1534_s25  ;;  %s1536_s26 = smov (!%p33_p0, %s35_s26), %s1196_s21 }
  0x11   : > { %s40_s28 = ssub.s32 %s1192_s20, %s1534_s25  ;;  %p1324_p3 = por %p52_p2, %p51_p1 }
  0x12   : > { %p37_p4 = scmp.ge.s32.totalorder %s1536_s26, 2  ;;  %s264_s30 = sadd.s32 1, %s1172_s15 }
  0x13   : > { %p274_p5 = scmp.ne.s32.totalorder %s1172_s15, %s1168_s14  ;;  %p275_p6 = scmp.eq.s32.totalorder %s911_s23, 3 }
  0x14   : > { %s1538_s26 = smov (%p37_p4, %s1536_s26), 0  ;;  %p280_p8 = scmp.ne.s32.totalorder %s1168_s14, %s1164_s13 }
  0x15   : > { %1512 = sst [smem:[#allocation9_spill]] %s1538_s26  ;;  %p1333_p7 = por %p275_p6, %p274_p5 }
  0x16   : > { %s39_s12 = ssub.s32 %s1196_s21, %s1538_s26  ;;  %p281_p9 = scmp.eq.s32.totalorder %s912_s24, 3 }
  0x17   : > { %s41_s25 = sor.u32 %s40_s28, %s39_s12  ;;  %p262_p10 = scmp.eq.s32.totalorder %s39_s12, 0 }
  0x18   : > { %p42_p11 = scmp.eq.s32.totalorder %s41_s25, 0  ;;  %p1341_p12 = por %p281_p9, %p280_p8 }
  0x19   : > { %s1346_s9 = scalar_select %p262_p10, %s1172_s15, %s264_s30  }
  0x1a   : > { %s1514_s10 = scalar_select %p1341_p12, 1, 0 }
  0x1b   : > { %s1349_s23 = scalar_select %p42_p11, %s1180_s17, %s44_s27  }
  0x1c   : > { %1515 = sst [smem:[#allocation10_spill]] %s1514_s10  ;;  %p914_p13 = scmp.ge.s32.totalorder %s1200_s22, 4 }
  0x1e   : > { %321 = sbr.rel (%p914_p13) target bundleno = 50 (0x32), region = 48 }
  0x23   : > { %324 = sbr.rel (!%p1324_p3) target bundleno = 50 (0x32), region = 52  ;;  %s326_s24 = sand.u32 (%p1324_p3), 1, %s1180_s17  }
  0x24   : > { %s944_s28 = sshll.u32 (%p1324_p3), %s1196_s21, 4  ;;  %s915_s25 = sshll.u32 (%p1324_p3), %s326_s24, 5 }
  0x25   : > { %s331_s12 = sadd.s32 (%p1324_p3), %s1192_s20, %s944_s28  ;;  %s1516_s0 = sld [smem:[#allocation11_spill]] (%p1324_p3) }
  0x26   : > { %s918_s26 = sshll.u32 (%p1324_p3), %s331_s12, 2  ;;  %s328_s27 = scalar_lea.vmem (%p1324_p3), [#allocation3], %s915_s25 }
  0x2b   : > { %s333_s30 = scalar_lea.vmem %s1516_s0, %s918_s26 }
  0x2c   : > { %v350_v0 = vld [vmem:[%s333_s30] sm:$0xf]  ;;  %v352_v1 = vld [vmem:[%s333_s30 + $0x8] sm:$0xf]  ;;  %v354_v2 = vld [vmem:[%s333_s30 + $0x10] sm:$0xf] }
  0x2d   : > { %351 = vst [vmem:[%s328_s27] sm:$0xf] %v350_v0  ;;  %353 = vst [vmem:[%s328_s27 + $0x4] sm:$0xf] %v352_v1  ;;  %v356_v3 = vld [vmem:[%s333_s30 + $0x18] sm:$0xf] }
  0x2e   : > { %355 = vst [vmem:[%s328_s27 + $0x8] sm:$0xf] %v354_v2  ;;  %v358_v4 = vld [vmem:[%s333_s30 + $0x20] sm:$0xf]  ;;  %v360_v5 = vld [vmem:[%s333_s30 + $0x28] sm:$0xf] }
  0x2f   : > { %357 = vst [vmem:[%s328_s27 + $0xc] sm:$0xf] %v356_v3  ;;  %359 = vst [vmem:[%s328_s27 + $0x10] sm:$0xf] %v358_v4  ;;  %v362_v6 = vld [vmem:[%s333_s30 + $0x30] sm:$0xf] }
  0x30   : > { %361 = vst [vmem:[%s328_s27 + $0x14] sm:$0xf] %v360_v5  ;;  %v364_v7 = vld [vmem:[%s333_s30 + $0x38] sm:$0xf]  ;;  %363 = vst [vmem:[%s328_s27 + $0x18] sm:$0xf] %v362_v6 }
  0x31   : > { %365 = vst [vmem:[%s328_s27 + $0x1c] sm:$0xf] %v364_v7 }
  0x32 PF: > { %p919_p0 = scmp.ge.s32.totalorder %s1200_s22, 1  ;;  %p411_p1 = scmp.lt.s32.totalorder %s1200_s22, 5 }
  0x34   : > { %p412_p2 = pnand %p919_p0, %p411_p1 }
  0x35   : > { %s418_s10 = sand.u32 (!%p412_p2), 1, %s1176_s16   ;;  %s456_s13 = sand.u32 (!%p412_p2), 1, %s1168_s14  }
  0x36   : > { %415 = sbr.rel (%p412_p2) target bundleno = 1148 (0x47c), region = 97  ;;  %s920_s26 = sshll.u32 (!%p412_p2), %s418_s10, 5 }
  0x37   : > { %s1366_s29 = sshll.u32 (!%p412_p2), %s456_s13, 3  ;;  %p460_p3 = scmp.lt.s32.totalorder (!%p412_p2), %s1188_s19, 1 }
  0x38   : > { %s1517_s1 = sld [smem:[#allocation12_spill]] (!%p412_p2)  ;;  %s420_s27 = scalar_lea.vmem (!%p412_p2), [#allocation3], %s920_s26 }
  0x39   : > { %s458_s0 = scalar_lea.vmem (!%p412_p2), [#allocation4], %s1366_s29  ;;  %p923_p4 = scmp.ne.s32.totalorder (!%p412_p2), %s1184_s18, 0 }
  0x3b   : > { %s461_s24 = scalar_select %p460_p3, %s1188_s19, 1 }
  0x3c   : > { %468 = sbr.rel (%p923_p4) target bundleno = 67 (0x43), region = 105 }
  0x3d   : > { %s922_s28 = sshll.u32 %s461_s24, 3 }
  0x3e   : > { %s1373_s30 = scalar_lea.vmem %s1517_s1, %s922_s28 }
  0x41   : > { %vm469_vm0 = vcmask 261120   ;;  %v1202_v8 = vmov 0.0  }
  0x42   : > { %470 = vst.msk [vmem:[#allocation2] sm:$0xff] %vm469_vm0, %v1202_v8 }
  0x43 PF: > { %v946_v9 = vld [vmem:[%s420_s27] sm:$0xff]   ;;  %v488_v10 = vlaneseq  ;;  %s924_s16 = sshll.u32 %s1184_s18, 3  ;;  %v961_v11 = vld [vmem:[%s420_s27 + $0x8] sm:$0xff]   ;;  %v962_v12 = vld [vmem:[%s420_s27 + $0x10] sm:$0xff]   ;;  %vm504_vm2 = vcmask 261120   ;;  %vm569_vm3 = vcmask 1041409  }
  0x44   : > { %v963_v13 = vld [vmem:[%s420_s27 + $0x18] sm:$0xff]   ;;  %v947_v14 = vunpack.c.l.bf16 %v946_v9  ;;  %v491_v16 = vstv %s924_s16  ;;  %v948_v17 = vunpack.c.h.bf16 %v946_v9  ;;  %v951_v18 = vunpack.c.l.bf16 %v961_v11  ;;  %p925_p5 = scmp.ne.s32.totalorder %s1184_s18, 1 }
  0x45   : > { %v489_v15 = vshrl.u32 %v488_v10, 7  ;;  %v952_v19 = vunpack.c.h.bf16 %v961_v11  ;;  %v955_v20 = vunpack.c.l.bf16 %v962_v12  ;;  %v956_v21 = vunpack.c.h.bf16 %v962_v12  ;;  %s1518_s28 = sld [smem:[#allocation13_spill]] (!%p925_p5) }
  0x46   : > { %v959_v22 = vunpack.c.l.bf16 %v963_v13  ;;  %v960_v23 = vunpack.c.h.bf16 %v963_v13  ;;  %vm571_vm4 = vcmask 1042434   ;;  %vm573_vm5 = vcmask 1043459  }
  0x47   : > { %v492_v24 = vadd.s32 %v491_v16, %v489_v15  ;;  %vm575_vm6 = vcmask 1044484   ;;  %vm577_vm7 = vcmask 1045509   ;;  %vm579_vm8 = vcmask 1046534  }
  0x48   : > { %vm581_vm9 = vcmask 1047559  }
  0x49   : > { %vm493_vm1 = vcmp.lt.s32.totalorder %v492_v24, 12 }
  0x4a   : > { %v496_v25 = vsel %vm493_vm1, %v947_v14, 0.0  ;;  %v497_v26 = vsel %vm493_vm1, %v948_v17, 0.0  ;;  %v498_v27 = vsel %vm493_vm1, %v951_v18, 0.0  ;;  %v499_v28 = vsel %vm493_vm1, %v952_v19, 0.0 }
  0x4b   : > { %v500_v29 = vsel %vm493_vm1, %v955_v20, 0.0  ;;  %v501_v30 = vsel %vm493_vm1, %v956_v21, 0.0  ;;  %v502_v31 = vsel %vm493_vm1, %v959_v22, 0.0  ;;  %v503_v32 = vsel %vm493_vm1, %v960_v23, 0.0 }
  0x4c   : > { %v505_v33 = vsel %vm504_vm2, %v496_v25, 0.0  ;;  %v512_v34 = vsel %vm504_vm2, %v497_v26, 0.0  ;;  %v519_v35 = vsel %vm504_vm2, %v498_v27, 0.0  ;;  %v526_v36 = vsel %vm504_vm2, %v499_v28, 0.0 }
  0x4d   : > { %v506_v37 = vrot.slane %v505_v33, 4  ;;  %v513_v38 = vrot.slane %v512_v34, 4  ;;  %v520_v39 = vrot.slane %v519_v35, 4  ;;  %v527_v40 = vrot.slane %v526_v36, 4 }
  0x4e   : > { %v533_v41 = vsel %vm504_vm2, %v500_v29, 0.0  ;;  %v540_v42 = vsel %vm504_vm2, %v501_v30, 0.0  ;;  %v547_v43 = vsel %vm504_vm2, %v502_v31, 0.0  ;;  %v554_v44 = vsel %vm504_vm2, %v503_v32, 0.0  ;;  %v471_v29 = vld [vmem:[#allocation2] sm:$0xff] }
  0x4f   : > { %v507_v45 = vadd.f32 %v506_v37, %v505_v33  ;;  %v514_v46 = vadd.f32 %v513_v38, %v512_v34  ;;  %v521_v47 = vadd.f32 %v520_v39, %v519_v35  ;;  %v528_v48 = vadd.f32 %v527_v40, %v526_v36 }
  0x50   : > { %v534_v49 = vrot.slane %v533_v41, 4  ;;  %v541_v50 = vrot.slane %v540_v42, 4  ;;  %v548_v51 = vrot.slane %v547_v43, 4  ;;  %v555_v52 = vrot.slane %v554_v44, 4 }
  0x51   : > { %v508_v53 = vrot.slane %v507_v45, 2  ;;  %v515_v54 = vrot.slane %v514_v46, 2  ;;  %v522_v55 = vrot.slane %v521_v47, 2  ;;  %v529_v56 = vrot.slane %v528_v48, 2 }
  0x52   : > { %v535_v57 = vadd.f32 %v534_v49, %v533_v41  ;;  %v542_v58 = vadd.f32 %v541_v50, %v540_v42  ;;  %v549_v59 = vadd.f32 %v548_v51, %v547_v43  ;;  %v556_v60 = vadd.f32 %v555_v52, %v554_v44 }
  0x53   : > { %v509_v61 = vadd.f32 %v508_v53, %v507_v45  ;;  %v516_v62 = vadd.f32 %v515_v54, %v514_v46  ;;  %v523_v63 = vadd.f32 %v522_v55, %v521_v47  ;;  %v530_v0 = vadd.f32 %v529_v56, %v528_v48 }
  0x54   : > { %v536_v1 = vrot.slane %v535_v57, 2  ;;  %v543_v2 = vrot.slane %v542_v58, 2  ;;  %v550_v3 = vrot.slane %v549_v59, 2  ;;  %v557_v4 = vrot.slane %v556_v60, 2 }
  0x55   : > { %v510_v5 = vrot.slane %v509_v61, 1  ;;  %v517_v6 = vrot.slane %v516_v62, 1  ;;  %v524_v7 = vrot.slane %v523_v63, 1  ;;  %v531_v8 = vrot.slane %v530_v0, 1 }
  0x56   : > { %v537_v9 = vadd.f32 %v536_v1, %v535_v57  ;;  %v544_v10 = vadd.f32 %v543_v2, %v542_v58  ;;  %v551_v11 = vadd.f32 %v550_v3, %v549_v59  ;;  %v558_v12 = vadd.f32 %v557_v4, %v556_v60 }
  0x57   : > { %v511_v13 = vadd.f32 %v510_v5, %v509_v61  ;;  %v518_v14 = vadd.f32 %v517_v6, %v516_v62  ;;  %v525_v15 = vadd.f32 %v524_v7, %v523_v63  ;;  %v532_v16 = vadd.f32 %v531_v8, %v530_v0 }
  0x58   : > { %v538_v17 = vrot.slane %v537_v9, 1  ;;  %v545_v18 = vrot.slane %v544_v10, 1  ;;  %v552_v19 = vrot.slane %v551_v11, 1  ;;  %v559_v20 = vrot.slane %v558_v12, 1 }
  0x59   : > { %v570_v21 = vsel %vm569_vm3, %v518_v14, %v511_v13 }
  0x5a   : > { %v539_v22 = vadd.f32 %v538_v17, %v537_v9  ;;  %v546_v23 = vadd.f32 %v545_v18, %v544_v10  ;;  %v553_v24 = vadd.f32 %v552_v19, %v551_v11  ;;  %v572_v25 = vsel %vm571_vm4, %v525_v15, %v570_v21 }
  0x5b   : > { %v560_v26 = vadd.f32 %v559_v20, %v558_v12  ;;  %v574_v27 = vsel %vm573_vm5, %v532_v16, %v572_v25 }
  0x5c   : > { %v576_v28 = vsel %vm575_vm6, %v539_v22, %v574_v27 }
  0x5d   : > { %v578_v30 = vsel %vm577_vm7, %v546_v23, %v576_v28 }
  0x5e   : > { %v580_v31 = vsel %vm579_vm8, %v553_v24, %v578_v30  ;;  %589 = sbr.rel (%p925_p5) target bundleno = 1125 (0x465), region = 109 }
  0x5f   : > { %v582_v32 = vsel %vm581_vm9, %v560_v26, %v580_v31 }
  0x60   : > { %v584_v33 = vadd.f32 %v582_v32, %v471_v29 }
  0x62   : > { %585 = vst.msk [vmem:[#allocation2] sm:$0xff] %vm504_vm2, %v584_v33 }
  0x63   : > { %v592_v35 = vld [vmem:[%s1373_s30] sm:$0xff]  ;;  %v1082_v44 = vld [vmem:[%s1493_s4 + $0x8] sm:$0xff]   ;;  %v1203_v45 = vmov 0.0   ;;  %vm1204_vm10 = vmmov 0   ;;  %v1084_v47 = vld [vmem:[%s1495_s6 + $0x18] sm:$0xff]   ;;  %vm732_vm11 = vcmask 523264  }
  0x64   : > { %972 = vmatprep.subr.bf16.mxu0 %v1203_v45  ;;  %976 = vmatprep.mubr.msk.bf16.mxu0 %vm1204_vm10, %v1203_v45  ;;  %v1083_v46 = vld [vmem:[%s1493_s4] sm:$0xff]   ;;  %v1085_v48 = vld [vmem:[%s1495_s6 + $0x10] sm:$0xff]   ;;  %v1086_v59 = vld [vmem:[%s1495_s6 + $0x8] sm:$0xff]  }
  0x65   : > { %973 = vmatpush3.bf16.msra.mxu0 %v1082_v44  ;;  %980 = vmatprep.subr.bf16.mxu1 %v1203_v45  ;;  %v926_v53 = vld [vmem:[%s1491_s2] ss:$0 sm:$0xff] }
  0x66   : > { %974 = vmatprep.subr.bf16.mxu0 %v1203_v45  ;;  %988 = vmatprep.mubr.msk.bf16.mxu1 %vm1204_vm10, %v1203_v45  ;;  %v927_v55 = vld [vmem:[%s1492_s3] ss:$0 sm:$0xff] }
  0x67   : > { %981 = vmatpush3.bf16.msra.mxu1 %v1084_v47  ;;  %v1087_v60 = vld [vmem:[%s1495_s6] sm:$0xff]  }
  0x68   : > { %982 = vmatprep.subr.bf16.mxu1 %v1203_v45  ;;  %v928_v61 = vld [vmem:[%s1494_s5] ss:$0 sm:$0xff] }
  0x69   : > { %v590_v34 = vld [vmem:[#allocation2] sm:$0xff]  ;;  %975 = vmatpush3.bf16.msra.mxu0 %v1083_v46 }
  0x6a   : > { %v591_v36 = vmul.f32 2.0, %v590_v34  ;;  %v932_v5 = vld [vmem:[%s1496_s7] ss:$0 sm:$0xff] }
  0x6b   : > { %983 = vmatpush3.bf16.msra.mxu1 %v1085_v48  ;;  %v938_v22 = vld [vmem:[%s1497_s8] ss:$0 sm:$0xff] }
  0x6c   : > { %v593_v37 = vadd.f32 %v592_v35, %v591_v36  ;;  %984 = vmatprep.subr.bf16.mxu1 %v1203_v45  ;;  %v939_v24 = vld [vmem:[%s1518_s28] ss:$0 sm:$0xff] }
  0x6e   : > { %v596_v38 = vsel %vm504_vm2, %v593_v37, 0.0 }
  0x6f   : > { %597 = vadd.xlane.f32.xlu0 %v596_v38  ;;  %985 = vmatpush3.bf16.msra.mxu1 %v1086_v59 }
  0x70   : > { %986 = vmatprep.subr.bf16.mxu1 %v1203_v45 }
  0x73   : > { %987 = vmatpush3.bf16.msra.mxu1 %v1087_v60 }
  0xf8   : > { %v598_v39 = vpop.xlane.xlu0 %597 }
  0xf9   : > { %v600_v40 = vmul.f32 0.03125, %v598_v39 }
  0xfb   : > { %v601_v41 = vsub.f32 %v593_v37, %v600_v40 }
  0xfd   : > { %v602_v42 = vmul.f32 %v601_v41, %v601_v41 }
  0xff   : > { %v603_v43 = vsel %vm504_vm2, %v602_v42, 0.0 }
 0x100   : > { %604 = vadd.xlane.f32.xlu0 %v603_v43 }
 0x189   : > { %v605_v49 = vpop.xlane.xlu0 %604 }
 0x18a   : > { %v606_v50 = vmul.f32 0.03125, %v605_v49 }
 0x18c   : > { %v607_v51 = vadd.f32 1e-05, %v606_v50 }
 0x18e   : > { %1088 = vrsqrt.f32 %v607_v51 }
 0x19b   : > { %v1089_v52 = vpop.eup %1088 }
 0x19c   : > { %v609_v54 = vmul.f32 %v1089_v52, %v601_v41 }
 0x19e   : > { %v616_v56 = vmul.f32 %v926_v53, %v609_v54 }
 0x1a0   : > { %v623_v57 = vadd.f32 %v927_v55, %v616_v56 }
 0x1a2   : > { %v624_v58 = vpack.c.bf16 %v623_v57, %v623_v57 }
 0x1a4   : > { %977 = vmatmul.mubr.msk.bf16.vlgmr.msra.gmra.mxu0 %vm504_vm2, %v624_v58 }
 0x264   : > { %v685_v62 = vpop.f32.mrf.mxu0 }
 0x265   : > { %v686_v63 = vadd.f32 %v928_v61, %v685_v62 }
 0x266   : > { %v978_v0 = vpop.f32.mrf.mxu0 }
 0x267   : > { %v691_v1 = vmax.f32 %v686_v63, 0.0 }
 0x268   : > { %v688_v2 = vpop.f32.mrf.mxu0 }
 0x269   : > { %v692_v3 = vpack.c.bf16 %v691_v1, %v691_v1 }
 0x26a   : > { %v979_v4 = vpop.f32.mrf.mxu0 }
 0x26b   : > { %989 = vmatmul.mubr.msk.bf16.vlgmr.msra.gmra.mxu1 %vm732_vm11, %v692_v3 }
 0x32b   : > { %v770_v6 = vpop.f32.mrf.mxu1 }
 0x32c   : > { %v771_v7 = vadd.f32 %v932_v5, %v770_v6 }
 0x32d   : > { %v990_v8 = vpop.f32.mrf.mxu1 }
 0x32e   : > { %v776_v9 = vadd.f32 %v771_v7, %v623_v57 }
 0x32f   : > { %v773_v10 = vpop.f32.mrf.mxu1 }
 0x330   : > { %v779_v11 = vsel %vm504_vm2, %v776_v9, 0.0 }
 0x331   : > { %780 = vadd.xlane.f32.xlu1 %v779_v11  ;;  %v991_v12 = vpop.f32.mrf.mxu1 }
 0x3ba   : > { %v781_v13 = vpop.xlane.xlu1 %780 }
 0x3bb   : > { %v782_v14 = vmul.f32 0.03125, %v781_v13 }
 0x3bd   : > { %v783_v15 = vsub.f32 %v776_v9, %v782_v14 }
 0x3bf   : > { %v784_v16 = vmul.f32 %v783_v15, %v783_v15 }
 0x3c1   : > { %v785_v17 = vsel %vm504_vm2, %v784_v16, 0.0 }
 0x3c2   : > { %786 = vadd.xlane.f32.xlu1 %v785_v17 }
 0x44b   : > { %v787_v18 = vpop.xlane.xlu1 %786 }
 0x44c   : > { %v788_v19 = vmul.f32 0.03125, %v787_v18 }
 0x44e   : > { %v789_v20 = vadd.f32 1e-05, %v788_v19 }
 0x450   : > { %1090 = vrsqrt.f32 %v789_v20 }
 0x45d   : > { %v1091_v21 = vpop.eup %1090 }
 0x45e   : > { %v791_v23 = vmul.f32 %v1091_v21, %v783_v15 }
 0x460   : > { %v798_v25 = vmul.f32 %v938_v22, %v791_v23 }
 0x462   : > { %v805_v26 = vadd.f32 %v939_v24, %v798_v25 }
 0x464   : > { %806 = vst.msk [vmem:[%s458_s0] sm:$0xff] %vm504_vm2, %v805_v26 }
 0x465 PF: > { %s941_s25 = sshll.u32 %s1188_s19, 7  ;;  %s1519_s27 = sld [smem:[#allocation14_spill]] }
 0x466   : > { %s821_s10 = sshll.u32 %s458_s0, 4  ;;  %s808_s26 = scalar_lea.sflag [#allocation5], %s456_s13  ;;  %s822_s10 = int_to_ptr.vmem [resolvable:$true] %s821_s10 }
 0x467   : > { %s1092_s18 = scalar_lea.vmem %s822_s10, 128  ;;  %s1205_s24 = smov [#allocation4]  }
 0x468   : > { %p1093_p6 = scmp.ne.s32.totalorder %s822_s10, %s1092_s18  ;;  %s1096_s28 = sshll.u32 %s1205_s24, 4  ;;  %s1097_s28 = int_to_ptr.vmem [resolvable:$false] %s1096_s28 }
 0x469   : > { %s1098_s1 = scalar_lea.vmem %s1097_s28, 256  ;;  %p1099_p10 = scmp.lt.s32.totalorder %s822_s10, %s1097_s28 }
 0x46a   : > { %p1094_p8 = pnand %p1093_p6, %p1333_p7  ;;  %p1100_p11 = scmp.lt.s32.totalorder %s1098_s1, %s1092_s18 }
 0x46b   : > { %s819_s16 = scalar_lea.hbm %s1519_s27, %s941_s25 }
 0x46c   : > { %p1095_p9 = pneg %p1094_p8  ;;  %p1101_p13 = por %p1100_p11, %p1099_p10 }
 0x46e   : > { %p1102_p0 = pnand %p1101_p13, %p1095_p9 }
 0x470   : > { %1105 = shalt.err (!%p1102_p0)
}
 0x471   : > { %s1106_s19 = scalar_lea.hbm %s819_s16, 128  ;;  %s1110_s29 = scalar_lea.hbm %s1519_s27, 256 }
 0x472   : > { %p1107_p1 = scmp.ne.s32.totalorder %s819_s16, %s1106_s19  ;;  %p1111_p4 = scmp.lt.s32.totalorder %s819_s16, %s1519_s27 }
 0x473   : > { %p1112_p5 = scmp.lt.s32.totalorder %s1110_s29, %s1106_s19 }
 0x474   : > { %p1108_p2 = pnand %p1107_p1, %p1333_p7 }
 0x475   : > { %p1113_p6 = por %p1112_p5, %p1111_p4 }
 0x476   : > { %p1109_p3 = pneg %p1108_p2 }
 0x478   : > { %p1114_p8 = pnand %p1113_p6, %p1109_p3 }
 0x47a   : > { %1117 = shalt.err (!%p1114_p8)
}
 0x47b   : > { %992 = dma.vmem_to_hbm [thread:$0]  (%p1333_p7), %s822_s10, 128, %s819_s16, %s808_s26  }
 0x47c PF: > { %s1520_s1 = sld [smem:[#allocation7_spill]]  ;;  %p998_p9 = scmp.ge.s32.totalorder %s1200_s22, 2 }
 0x47e   : > { %p995_p10 = pnand %p998_p9, %p1341_p12 }
 0x480   : > { %p996_p11 = pneg %p995_p10 }
 0x482   : > { %s833_s18 = sand.u32 1, %s1520_s1  }
 0x483   : > { %s834_s24 = scalar_lea.sflag [#allocation5], %s833_s18 }
 0x484   : > { %1159 = dma.done.wait (%p996_p11), %s834_s24, 128  }
 0x485   : > { %1161 = vsyncadd (%p996_p11), %s834_s24, 4294967168  ;;  %s23_s22 = sadd.s32 1, %s1200_s22   ;;  %s1522_s11 = sld [smem:[#allocation8_spill]] }
 0x486   : > { %p20_p13 = scmp.ge.s32.totalorder %s23_s22, 6   ;;  %s1523_s10 = sld [smem:[#allocation9_spill]] }
 0x487   : > { %s1524_s13 = smov %s1168_s14  ;;  %s1525_s14 = smov %s1172_s15 }
 0x488   : > { %s1526_s15 = smov %s1346_s9  ;;  %s1527_s16 = smov %s1180_s17 }
 0x489   : > { %s1528_s17 = smov %s1349_s23  ;;  %s1529_s18 = smov %s1192_s20 }
 0x48a   : > { %s1530_s19 = smov %s1196_s21  ;;  %22 = sbr.rel (!%p20_p13) target bundleno = 11 (0xb), region = 152 }
 0x48b   : > { %s1531_s20 = smov %s1522_s11 }
 0x48c   : > { %s1532_s21 = smov %s1523_s10 }
 0x48f   :  { %839 = vsyncpa [#allocation5], 1 }
 0x490   :  { %841 = vsyncpa [#allocation5 + $0x1], 1 }

</bundles_post_ra>
